<compile_context>
chip_gen: v7x
topology: tpu7x:2x2x1
jax: 0.10.0
libtpu: 0.0.40
codegen_flags: <defaults>
</compile_context>

<pallas_src>
import functools

import jax
import jax.numpy as jnp
from jax import lax
from jax.experimental import pallas as pl
from jax.experimental.pallas import tpu as pltpu


def _seq_tile(n):
    # Lane/sublane-friendly sequence tile: 128 when it divides N, else the full extent
    # (full-extent blocks always satisfy the (8, 128) tiling rule).
    return 128 if n % 128 == 0 else n


# --------------------------------------------------------------------------- #
# Kernel 1: fused LayerNorm + QKV projection
# --------------------------------------------------------------------------- #
def _ln_qkv_kernel(x_ref, g_ref, b_ref, w_ref, qkv_ref, *, eps):
    x = x_ref[0].astype(jnp.float32)                              # (tn, dim)
    mean = jnp.mean(x, axis=-1, keepdims=True)
    xc = x - mean
    var = jnp.mean(xc * xc, axis=-1, keepdims=True)
    xn = xc * lax.rsqrt(var + eps)
    xn = xn * g_ref[0].astype(jnp.float32) + b_ref[0].astype(jnp.float32)
    qkv_ref[0] = jnp.dot(
        xn, w_ref[...].astype(jnp.float32),
        preferred_element_type=jnp.float32,
    ).astype(qkv_ref.dtype)


def _ln_qkv(x, gamma, beta, w_qkv, *, eps=1e-5):
    b, n, d = x.shape
    d3 = w_qkv.shape[1]
    tn = _seq_tile(n)
    return pl.pallas_call(
        functools.partial(_ln_qkv_kernel, eps=eps),
        out_shape=jax.ShapeDtypeStruct((b, n, d3), x.dtype),
        grid_spec=pltpu.PrefetchScalarGridSpec(
            num_scalar_prefetch=0,
            grid=(b, n // tn),
            in_specs=[
                pl.BlockSpec((1, tn, d), lambda i, j: (i, j, 0)),
                pl.BlockSpec((1, d), lambda i, j: (0, 0)),
                pl.BlockSpec((1, d), lambda i, j: (0, 0)),
                pl.BlockSpec((d, d3), lambda i, j: (0, 0)),
            ],
            out_specs=pl.BlockSpec((1, tn, d3), lambda i, j: (i, j, 0)),
        ),
        compiler_params=pltpu.CompilerParams(
            dimension_semantics=("parallel", "parallel")),
    )(x, gamma.reshape(1, d), beta.reshape(1, d), w_qkv)


# --------------------------------------------------------------------------- #
# Kernel 2: flash-style attention (online softmax), heads folded into batch
# --------------------------------------------------------------------------- #
def _flash_attn_kernel(q_ref, k_ref, v_ref, o_ref, m_sc, l_sc, acc_sc, *, scale):
    kv = pl.program_id(2)

    @pl.when(kv == 0)
    def _init():
        m_sc[...] = jnp.full_like(m_sc[...], -jnp.inf)
        l_sc[...] = jnp.zeros_like(l_sc[...])
        acc_sc[...] = jnp.zeros_like(acc_sc[...])

    q = q_ref[0].astype(jnp.float32)                              # (tq, dh)
    k = k_ref[0].astype(jnp.float32)                              # (tk, dh)
    v = v_ref[0].astype(jnp.float32)                              # (tk, dh)

    # Contract on dh without an explicit transpose of k.
    s = lax.dot_general(q, k, (((1,), (1,)), ((), ())),
                        preferred_element_type=jnp.float32) * scale   # (tq, tk)

    m_prev = m_sc[...]
    m_new = jnp.maximum(m_prev, jnp.max(s, axis=-1, keepdims=True))
    alpha = jnp.exp(m_prev - m_new)
    p = jnp.exp(s - m_new)

    l_sc[...] = alpha * l_sc[...] + jnp.sum(p, axis=-1, keepdims=True)
    acc_sc[...] = alpha * acc_sc[...] + jnp.dot(
        p, v, preferred_element_type=jnp.float32)
    m_sc[...] = m_new

    @pl.when(kv == pl.num_programs(2) - 1)
    def _finalize():
        o_ref[0] = (acc_sc[...] / l_sc[...]).astype(o_ref.dtype)


def _attention(q, k, v):
    # q, k, v: (B*H, N, dh)
    bh, n, dh = q.shape
    tq = _seq_tile(n)
    tk = _seq_tile(n)
    scale = float(dh) ** -0.5
    return pl.pallas_call(
        functools.partial(_flash_attn_kernel, scale=scale),
        out_shape=jax.ShapeDtypeStruct((bh, n, dh), q.dtype),
        grid_spec=pltpu.PrefetchScalarGridSpec(
            num_scalar_prefetch=0,
            grid=(bh, n // tq, n // tk),
            in_specs=[
                pl.BlockSpec((1, tq, dh), lambda i, qi, ki: (i, qi, 0)),
                pl.BlockSpec((1, tk, dh), lambda i, qi, ki: (i, ki, 0)),
                pl.BlockSpec((1, tk, dh), lambda i, qi, ki: (i, ki, 0)),
            ],
            out_specs=pl.BlockSpec((1, tq, dh), lambda i, qi, ki: (i, qi, 0)),
            scratch_shapes=[
                pltpu.VMEM((tq, 1), jnp.float32),   # running max
                pltpu.VMEM((tq, 1), jnp.float32),   # running denom
                pltpu.VMEM((tq, dh), jnp.float32),  # un-normalized output acc
            ],
        ),
        compiler_params=pltpu.CompilerParams(
            dimension_semantics=("parallel", "parallel", "arbitrary")),
    )(q, k, v)


# --------------------------------------------------------------------------- #
# Kernel 3: output projection (+ bias)
# --------------------------------------------------------------------------- #
def _out_proj_kernel(x_ref, w_ref, b_ref, o_ref):
    acc = jnp.dot(
        x_ref[0].astype(jnp.float32), w_ref[...].astype(jnp.float32),
        preferred_element_type=jnp.float32,
    )
    o_ref[0] = (acc + b_ref[0].astype(jnp.float32)).astype(o_ref.dtype)


def _out_proj(x, w, bias):
    b, n, di = x.shape
    do = w.shape[1]
    tn = _seq_tile(n)
    return pl.pallas_call(
        _out_proj_kernel,
        out_shape=jax.ShapeDtypeStruct((b, n, do), x.dtype),
        grid_spec=pltpu.PrefetchScalarGridSpec(
            num_scalar_prefetch=0,
            grid=(b, n // tn),
            in_specs=[
                pl.BlockSpec((1, tn, di), lambda i, j: (i, j, 0)),
                pl.BlockSpec((di, do), lambda i, j: (0, 0)),
                pl.BlockSpec((1, do), lambda i, j: (0, 0)),
            ],
            out_specs=pl.BlockSpec((1, tn, do), lambda i, j: (i, j, 0)),
        ),
        compiler_params=pltpu.CompilerParams(
            dimension_semantics=("parallel", "parallel")),
    )(x, w, bias.reshape(1, do))


# --------------------------------------------------------------------------- #
# Module forward
# --------------------------------------------------------------------------- #
def attention_forward(x, params, *, heads, dim_head, eps=1e-5):
    """JAX/Pallas equivalent of Attention.forward (inference / dropout = 0)."""
    b, n, dim = x.shape
    inner = heads * dim_head

    qkv = _ln_qkv(x, params["ln_gamma"], params["ln_beta"], params["w_qkv"], eps=eps)
    q, k, v = jnp.split(qkv, 3, axis=-1)                       # each (B, N, inner)

    def split_heads(t):  # 'b n (h d) -> (b h) n d'
        return (t.reshape(b, n, heads, dim_head)
                 .transpose(0, 2, 1, 3)
                 .reshape(b * heads, n, dim_head))

    q, k, v = map(split_heads, (q, k, v))
    o = _attention(q, k, v)                                    # (B*H, N, dh)

    # '(b h) n d -> b n (h d)'
    o = (o.reshape(b, heads, n, dim_head)
          .transpose(0, 2, 1, 3)
          .reshape(b, n, inner))

    project_out = not (heads == 1 and dim_head == dim)
    if project_out:
        o = _out_proj(o, params["w_out"], params["b_out"])
    return o


if __name__ == "__main__":
    jax.config.update("jax_default_matmul_precision", "highest")

    B, N, DIM = 2, 8, 32
    HEADS, DIM_HEAD = 4, 8
    INNER = HEADS * DIM_HEAD

    key = jax.random.PRNGKey(0)
    k1, k2, k3, k4, k5, k6 = jax.random.split(key, 6)
    x = jax.random.normal(k1, (B, N, DIM), jnp.float32)
    params = {
        "ln_gamma": 1.0 + 0.1 * jax.random.normal(k5, (DIM,), jnp.float32),
        "ln_beta": 0.1 * jax.random.normal(k6, (DIM,), jnp.float32),
        "w_qkv": jax.random.normal(k2, (DIM, 3 * INNER), jnp.float32) / jnp.sqrt(DIM),
        "w_out": jax.random.normal(k3, (INNER, DIM), jnp.float32) / jnp.sqrt(INNER),
        "b_out": 0.02 * jax.random.normal(k4, (DIM,), jnp.float32),
    }

    out = attention_forward(x, params, heads=HEADS, dim_head=DIM_HEAD)
    out = jax.block_until_ready(out)

    # -------------------- pure-JAX reference -------------------- #
    def reference(x):
        mean = x.mean(-1, keepdims=True)
        var = ((x - mean) ** 2).mean(-1, keepdims=True)
        xn = (x - mean) / jnp.sqrt(var + 1e-5)
        xn = xn * params["ln_gamma"] + params["ln_beta"]
        qkv = xn @ params["w_qkv"]
        q, k, v = jnp.split(qkv, 3, axis=-1)

        def heads_of(t):
            return t.reshape(B, N, HEADS, DIM_HEAD).transpose(0, 2, 1, 3)

        q, k, v = map(heads_of, (q, k, v))
        s = jnp.einsum("bhqd,bhkd->bhqk", q, k) * (DIM_HEAD ** -0.5)
        p = jax.nn.softmax(s, axis=-1)
        o = jnp.einsum("bhqk,bhkd->bhqd", p, v)
        o = o.transpose(0, 2, 1, 3).reshape(B, N, INNER)
        return o @ params["w_out"] + params["b_out"]

    ref = reference(x)
    assert out.shape == (B, N, DIM), out.shape
    max_err = float(jnp.max(jnp.abs(out - ref)))
    assert jnp.allclose(out, ref, rtol=1e-4, atol=1e-4), f"max abs err {max_err}"

    print("KERNEL_OK")
</pallas_src>

<mosaic_0001>
module attributes {stable_mosaic.version = 11 : i64} {
  func.func @_ln_qkv_kernel(%arg0: i32, %arg1: i32, %arg2: memref<1x8x32xf32, #tpu.memory_space<vmem>>, %arg3: memref<1x32xf32, #tpu.memory_space<vmem>>, %arg4: memref<1x32xf32, #tpu.memory_space<vmem>>, %arg5: memref<32x96xf32, #tpu.memory_space<vmem>>, %arg6: memref<1x8x96xf32, #tpu.memory_space<vmem>>) attributes {dimension_semantics = [#tpu.dimension_semantics<parallel>, #tpu.dimension_semantics<parallel>], iteration_bounds = array<i64: 2, 1>, scalar_prefetch = 0 : i64, scratch_operands = 0 : i64, tpu.core_type = #tpu.core_type<tc>, window_params = [{transform_indices = @transform_0, window_bounds = array<i64: 1, 8, 32>}, {pipeline_mode = #tpu.pipeline_mode<synchronous>, transform_indices = @transform_1, window_bounds = array<i64: 1, 32>}, {pipeline_mode = #tpu.pipeline_mode<synchronous>, transform_indices = @transform_2, window_bounds = array<i64: 1, 32>}, {pipeline_mode = #tpu.pipeline_mode<synchronous>, transform_indices = @transform_3, window_bounds = array<i64: 32, 96>}, {transform_indices = @transform_4, window_bounds = array<i64: 1, 8, 96>}]} {
    %c0 = arith.constant 0 : index
    %c0_0 = arith.constant 0 : index
    %c0_1 = arith.constant 0 : index
    %0 = vector.load %arg2[%c0, %c0_0, %c0_1] : memref<1x8x32xf32, #tpu.memory_space<vmem>>, vector<1x8x32xf32>
    %1 = vector.shape_cast %0 : vector<1x8x32xf32> to vector<8x32xf32>
    %cst = arith.constant dense<0.000000e+00> : vector<8xf32>
    %2 = vector.multi_reduction <add>, %1, %cst [1] : vector<8x32xf32> to vector<8xf32>
    %3 = vector.shape_cast %2 : vector<8xf32> to vector<8x1xf32>
    %cst_2 = arith.constant 3.200000e+01 : f32
    %4 = vector.broadcast %cst_2 : f32 to vector<8x1xf32>
    %5 = arith.divf %3, %4 : vector<8x1xf32>
    %6 = vector.broadcast %5 : vector<8x1xf32> to vector<8x32xf32>
    %7 = arith.subf %1, %6 : vector<8x32xf32>
    %8 = arith.mulf %7, %7 : vector<8x32xf32>
    %cst_3 = arith.constant dense<0.000000e+00> : vector<8xf32>
    %9 = vector.multi_reduction <add>, %8, %cst_3 [1] : vector<8x32xf32> to vector<8xf32>
    %10 = vector.shape_cast %9 : vector<8xf32> to vector<8x1xf32>
    %cst_4 = arith.constant 3.200000e+01 : f32
    %11 = vector.broadcast %cst_4 : f32 to vector<8x1xf32>
    %12 = arith.divf %10, %11 : vector<8x1xf32>
    %cst_5 = arith.constant 9.99999974E-6 : f32
    %13 = vector.broadcast %cst_5 : f32 to vector<8x1xf32>
    %14 = arith.addf %12, %13 : vector<8x1xf32>
    %15 = math.rsqrt %14 : vector<8x1xf32>
    %16 = vector.broadcast %15 : vector<8x1xf32> to vector<8x32xf32>
    %17 = arith.mulf %7, %16 : vector<8x32xf32>
    %c0_6 = arith.constant 0 : index
    %c0_7 = arith.constant 0 : index
    %18 = vector.load %arg3[%c0_6, %c0_7] : memref<1x32xf32, #tpu.memory_space<vmem>>, vector<1x32xf32>
    %19 = vector.shape_cast %18 : vector<1x32xf32> to vector<32xf32>
    %20 = vector.shape_cast %19 : vector<32xf32> to vector<1x32xf32>
    %21 = vector.broadcast %20 : vector<1x32xf32> to vector<8x32xf32>
    %22 = arith.mulf %17, %21 : vector<8x32xf32>
    %c0_8 = arith.constant 0 : index
    %c0_9 = arith.constant 0 : index
    %23 = vector.load %arg4[%c0_8, %c0_9] : memref<1x32xf32, #tpu.memory_space<vmem>>, vector<1x32xf32>
    %24 = vector.shape_cast %23 : vector<1x32xf32> to vector<32xf32>
    %25 = vector.shape_cast %24 : vector<32xf32> to vector<1x32xf32>
    %26 = vector.broadcast %25 : vector<1x32xf32> to vector<8x32xf32>
    %27 = arith.addf %22, %26 : vector<8x32xf32>
    %c0_10 = arith.constant 0 : index
    %c0_11 = arith.constant 0 : index
    %28 = vector.load %arg5[%c0_10, %c0_11] : memref<32x96xf32, #tpu.memory_space<vmem>>, vector<32x96xf32>
    %cst_12 = arith.constant dense<0.000000e+00> : vector<8x96xf32>
    %29 = tpu.matmul %27, %28, %cst_12 {dimension_numbers = #tpu.dot_dimension_numbers<[1], [0], [0], [1], [0, 0, 1, 1], [], []>, precision = #tpu.contract_precision<fp32>} : vector<8x32xf32>, vector<32x96xf32>, vector<8x96xf32> -> vector<8x96xf32>
    %c0_13 = arith.constant 0 : index
    %c0_14 = arith.constant 0 : index
    %c0_15 = arith.constant 0 : index
    %30 = vector.load %arg6[%c0_13, %c0_14, %c0_15] : memref<1x8x96xf32, #tpu.memory_space<vmem>>, vector<1x8x96xf32>
    %31 = vector.shape_cast %30 : vector<1x8x96xf32> to vector<8x96xf32>
    %32 = vector.shape_cast %29 : vector<8x96xf32> to vector<1x8x96xf32>
    tpu.vector_store %arg6[%c0_13, %c0_14, %c0_15], %32 {strides = array<i32>} : memref<1x8x96xf32, #tpu.memory_space<vmem>>, vector<1x8x96xf32>,
    return
  }
  func.func @transform_0(%arg0: i32, %arg1: i32) -> (i32, i32, i32) {
    %c0_i32 = arith.constant 0 : i32
    %c0_i32_0 = arith.constant 0 : i32
    return %arg0, %arg1, %c0_i32 : i32, i32, i32
  }
  func.func @transform_1(%arg0: i32, %arg1: i32) -> (i32, i32) {
    %c0_i32 = arith.constant 0 : i32
    %c0_i32_0 = arith.constant 0 : i32
    %c0_i32_1 = arith.constant 0 : i32
    return %c0_i32, %c0_i32_0 : i32, i32
  }
  func.func @transform_2(%arg0: i32, %arg1: i32) -> (i32, i32) {
    %c0_i32 = arith.constant 0 : i32
    %c0_i32_0 = arith.constant 0 : i32
    %c0_i32_1 = arith.constant 0 : i32
    return %c0_i32, %c0_i32_0 : i32, i32
  }
  func.func @transform_3(%arg0: i32, %arg1: i32) -> (i32, i32) {
    %c0_i32 = arith.constant 0 : i32
    %c0_i32_0 = arith.constant 0 : i32
    %c0_i32_1 = arith.constant 0 : i32
    return %c0_i32, %c0_i32_0 : i32, i32
  }
  func.func @transform_4(%arg0: i32, %arg1: i32) -> (i32, i32, i32) {
    %c0_i32 = arith.constant 0 : i32
    %c0_i32_0 = arith.constant 0 : i32
    return %arg0, %arg1, %c0_i32 : i32, i32, i32
  }
}

</mosaic_0001>

<bundles_post_ra>
// kernel: tpu_custom_call.1
= control target key start
LH: loop header
LB: loop body
LE: loop exit
PB: predicated region body
PF: predicated region fallthrough
CT: control target
= control target key end

     0   :  { %9 = vsyncpa [#allocation3], 0  ;;  %s1564_s0 = inlined_call_operand.hbm [shape: f32[2,8,32], index: 0, kind: input, shape index: {}]   ;;  %s1565_s1 = inlined_call_operand.vmem [shape: f32[1,32], index: 1, kind: input, shape index: {}]   ;;  %s1566_s2 = inlined_call_operand.vmem [shape: f32[1,32], index: 2, kind: input, shape index: {}]   ;;  %s1567_s3 = inlined_call_operand.hbm [shape: f32[32,96], index: 3, kind: input, shape index: {}]   ;;  %s1568_s4 = inlined_call_operand.hbm [shape: f32[2,8,96], index: 4, kind: output, shape index: {}]  }
   0x1   :  { %11 = vsyncpa [#allocation3 + $0x1], 0 }
   0x2   :  { %12 = vsyncpa [#allocation6], 0 }
   0x3   :  { %13 = vsyncpa [#allocation4], 0 }
   0x4   :  { %15 = vsyncpa [#allocation4 + $0x1], 0  ;;  %s1293_s15 = smov 0   ;;  %s1295_s16 = smov 0  }
   0x5   :  { %s1297_s17 = smov 0   ;;  %s1299_s18 = smov 0  }
   0x6   :  { %s1301_s19 = smov 0   ;;  %s1303_s20 = smov 0  }
   0x7 LB: > { %s876_s21 = sadd.s32 4294967295, %s1258_s20   ;;  %s877_s22 = sadd.s32 4294967294, %s1258_s20   ;;  %s1258_s20 = sphi %s1303_s20, %s21_s20   ;;  %s1254_s19 = sphi %s1301_s19, %s1592_s19   ;;  %s1250_s18 = sphi %s1299_s18, %s1591_s18   ;;  %s1246_s17 = sphi %s1297_s17, %s1590_s17   ;;  %s1242_s16 = sphi %s1295_s16, %s1589_s16   ;;  %s1238_s15 = sphi %s1293_s15, %s1588_s15  }
   0x8   : > { %p55_p0 = scmp.ne.s32.totalorder %s1242_s16, %s1238_s15  ;;  %p1327_p1 = scmp.eq.s32.totalorder %s876_s21, 0 }
   0x9   : > { %p1331_p2 = scmp.eq.s32.totalorder %s876_s21, 1  ;;  %p150_p3 = scmp.eq.s32.totalorder %s877_s22, 1 }
   0xa   : > { %s1573_s23 = scalar_select %p1327_p1, 1, 0 }
   0xb   : > { %s1574_s24 = scalar_select %p1331_p2, 1, 0 }
   0xc   : > { %p1337_p4 = por %p1327_p1, %p55_p0  ;;  %p878_p5 = scmp.ge.s32.totalorder %s1258_s20, 1 }
   0xd   : > { %p1342_p6 = por %p150_p3, %p55_p0  ;;  %p157_p7 = scmp.lt.s32.totalorder %s1258_s20, 3 }
   0xe   : > { %s1575_s25 = scalar_select %p1337_p4, 1, 0 }
   0xf   : > { %s1576_s26 = scalar_select %p1342_p6, 1, 0 }
  0x10   : > { %p1347_p8 = pnand %p878_p5, %p157_p7  ;;  %s1260_s28 = smov [#allocation5]  }
  0x11   : > { %s175_s29 = sshll.u32 %s1260_s28, 4  ;;  %s33_s5 = sadd.s32 1, %s1254_s19  ;;  %s176_s29 = int_to_ptr.vmem [resolvable:$true] %s175_s29 }
  0x12   : > { %s1577_s27 = scalar_select %p1347_p8, 1, 0 }
  0x13   : > { %p1042_p9 = pneg %p1347_p8  ;;  %s1114_s8 = scalar_lea.hbm %s1567_s3, 512 }
  0x14   : > { %p1115_p12 = scmp.ne.s32.totalorder %s1567_s3, %s1114_s8  ;;  %p1121_p5 = scmp.lt.u32.totalorder %s1114_s8, %s1567_s3 }
  0x15   : > { %p1356_p11 = pnand %p1042_p9, %p1327_p1 }
  0x17   : > { %p1116_p13 = pneg %p1356_p11 }
  0x19   : > { %p1117_p0 = pnand %p1116_p13, %p1115_p12 }
  0x1b   : > { %p1118_p3 = pneg %p1117_p0 }
  0x1d   : > { %p1123_p7 = pnand %p1121_p5, %p1118_p3 }
  0x1f   : > { %1126 = shalt.err (!%p1123_p7)
}
  0x20   : > { %s1127_s13 = scalar_lea.vmem %s176_s29, 512  ;;  %p1135_p1 = scmp.lt.s32.totalorder %s176_s29, %s176_s29 }
  0x21   : > { %p1128_p9 = scmp.ne.s32.totalorder %s176_s29, %s1127_s13  ;;  %p1136_p4 = scmp.lt.s32.totalorder %s1127_s13, %s1127_s13 }
  0x23   : > { %p1130_p10 = pnand %p1128_p9, %p1116_p13  ;;  %p1137_p8 = por %p1136_p4, %p1135_p1 }
  0x25   : > { %p1131_p6 = pneg %p1130_p10 }
  0x27   : > { %p1138_p2 = pnand %p1137_p8, %p1131_p6 }
  0x29   : > { %1141 = shalt.err (!%p1138_p2)
}
  0x2a   : > { %s1261_s14 = smov 128   ;;  %s1262_s21 = smov 8  }
  0x2b   : > { %1045 = dma.hbm_to_vmem [thread:$0]  (!%p1356_p11), %s1567_s3, 512, %s176_s29, [#allocation6], %s1261_s14, %s1261_s14, %s1262_s21  }
  0x2c   : > { %p35_p1 = scmp.ge.s32.totalorder %s33_s5, 2  ;;  %s42_s6 = sadd.s32 1, %s1246_s17 }
  0x2d   : > { %p49_p2 = scmp.ne.s32.totalorder %s1246_s17, %s1242_s16  ;;  %p50_p4 = scmp.eq.s32.totalorder %s1258_s20, 0 }
  0x2e   : > { %s1594_s5 = smov (%p35_p1, %s33_s5), 0  ;;  %p1580_p8 = scmp.ne.s32.totalorder %s1574_s24, 0 }
  0x2f   : > { %p1383_p6 = por %p50_p4, %p49_p2  ;;  %s37_s30 = ssub.s32 %s1254_s19, %s1594_s5 }
  0x30   : > { %p1389_p10 = por %p1580_p8, %p49_p2  ;;  %p1055_p12 = scmp.lt.s32.totalorder %s1258_s20, 2 }
  0x31   : > { %p40_p11 = scmp.eq.s32.totalorder %s37_s30, 0  ;;  %s189_s29 = sand.u32 1, %s1246_s17  }
  0x32   : > { %s881_s9 = sshll.u32 %s189_s29, 3  ;;  %s882_s11 = sshll.u32 %s1254_s19, 7 }
  0x33   : > { %s1398_s10 = scalar_select %p40_p11, %s1246_s17, %s42_s6  }
  0x34   : > { %s1404_s14 = scalar_lea.hbm %s1564_s0, %s882_s11  ;;  %s193_s24 = scalar_lea.vmem [#allocation2], %s881_s9 }
  0x35   : > { %s201_s21 = sshll.u32 %s193_s24, 4  ;;  %p1410_p13 = pnand %p1055_p12, %p1383_p6  ;;  %s1406_s21 = int_to_ptr.vmem [resolvable:$true] %s201_s21 }
  0x36   : > { %s190_s28 = scalar_lea.sflag [#allocation3], %s189_s29  ;;  %s1142_s6 = scalar_lea.hbm %s1404_s14, 128 }
  0x37   : > { %p1143_p0 = scmp.ne.s32.totalorder %s1404_s14, %s1142_s6  ;;  %p1144_p3 = pneg %p1410_p13 }
  0x38   : > { %s1147_s11 = scalar_lea.hbm %s1564_s0, 256  ;;  %p1148_p9 = scmp.lt.u32.totalorder %s1404_s14, %s1564_s0 }
  0x39   : > { %p1145_p5 = pnand %p1144_p3, %p1143_p0  ;;  %p1149_p1 = scmp.lt.u32.totalorder %s1147_s11, %s1142_s6 }
  0x3a   : > { %p1151_p4 = scmp.lt.u32.totalorder %s1142_s6, %s1404_s14 }
  0x3b   : > { %p1146_p7 = pneg %p1145_p5  ;;  %p1150_p2 = por %p1149_p1, %p1148_p9 }
  0x3d   : > { %p1152_p6 = por %p1151_p4, %p1150_p2 }
  0x3f   : > { %p1153_p8 = pnand %p1152_p6, %p1146_p7 }
  0x41   : > { %1156 = shalt.err (!%p1153_p8)
}
  0x42   : > { %s1157_s29 = scalar_lea.vmem %s1406_s21, 128  ;;  %s1263_s13 = smov [#allocation2]  }
  0x43   : > { %p1158_p12 = scmp.ne.s32.totalorder %s1406_s21, %s1157_s29  ;;  %s1162_s24 = sshll.u32 %s1263_s13, 4  ;;  %s1163_s24 = int_to_ptr.vmem [resolvable:$false] %s1162_s24 }
  0x44   : > { %s1164_s30 = scalar_lea.vmem %s1163_s24, 256  ;;  %p1165_p5 = scmp.lt.s32.totalorder %s1406_s21, %s1163_s24 }
  0x45   : > { %p1160_p11 = pnand %p1158_p12, %p1144_p3  ;;  %p1166_p9 = scmp.lt.s32.totalorder %s1164_s30, %s1157_s29 }
  0x47   : > { %p1161_p0 = pneg %p1160_p11  ;;  %p1167_p1 = por %p1166_p9, %p1165_p5 }
  0x49   : > { %p1168_p2 = pnand %p1167_p1, %p1161_p0 }
  0x4b   : > { %1171 = shalt.err (!%p1168_p2)
}
  0x4c   : > { %1049 = dma.hbm_to_vmem [thread:$0]  (!%p1410_p13), %s1404_s14, 128, %s1406_s21, %s190_s28  }
  0x4d   : > { %p1583_p7 = scmp.ne.s32.totalorder %s1577_s27, 0 }
  0x4e   : > { %s1442_s6 = sand.u32 (!%p1583_p7), 1, %s1242_s16   ;;  %p1584_p3 = scmp.ne.s32.totalorder (!%p1583_p7), %s1575_s25, 0 }
  0x4f   : > { %210 = sbr.rel (%p1583_p7) target bundleno = 659 (0x293), region = 36  ;;  %s884_s9 = sshll.u32 (!%p1583_p7), %s1442_s6, 3 }
  0x50   : > { %s213_s11 = scalar_lea.sflag (!%p1583_p7), [#allocation3], %s1442_s6  ;;  %s216_s7 = scalar_lea.vmem (!%p1583_p7), [#allocation2], %s884_s9 }
  0x56   : > { %1225 = dma.done.wait (%p1584_p3), %s213_s11, 128  }
  0x57   : > { %1227 = vsyncadd (%p1584_p3), %s213_s11, 4294967168  ;;  %p1585_p13 = scmp.ne.s32.totalorder %s1573_s23, 0 }
  0x59   : > { %1229 = dma.done.wait (%p1585_p13), [#allocation6], 512  }
  0x5a   : > { %1231 = vsyncadd (%p1585_p13), [#allocation6], 4294966784  ;;  %vm246_vm0 = vcmask 261120   ;;  %v245_v0 = vld [vmem:[%s216_s7] sm:$0xff]  ;;  %v277_v7 = vld [vmem:[#allocation5] sm:$0xff]  ;;  %v1264_v10 = vmov 0.0|0.0  }
  0x5b   : > { %v247_v1 = vsel %vm246_vm0, %v245_v0, 0.0  ;;  %v278_v8 = vld [vmem:[#allocation5 + $0x8] sm:$0xff]  ;;  %v279_v9 = vld [vmem:[#allocation5 + $0x10] sm:$0xff]  ;;  %1007 = vmatprep.subr.bf16.mxu0 %v1264_v10  ;;  %v285_v11 = vand.u32 4294901760, %v277_v7  ;;  %989 = vmatprep.subr.bf16.mxu1 %v1264_v10  ;;  %v280_v13 = vld [vmem:[#allocation5 + $0x18] sm:$0xff]  ;;  %vm1265_vm1 = vmmov 0  }
  0x5c   : > { %248 = vadd.xlane.f32.xlu0 %v247_v1  ;;  %v288_v12 = vand.u32 4294901760, %v278_v8  ;;  %v291_v14 = vand.u32 4294901760, %v279_v9  ;;  %v294_v15 = vand.u32 4294901760, %v280_v13  ;;  %v1266_v16 = vmov 0.0   ;;  %v887_v45 = vld [vmem:[%s1565_s1] ss:$0 sm:$0xff] }
  0x5d   : > { %964 = vmatprep.mubr.msk.f32.mxu0 %vm1265_vm1, %v1266_v16  ;;  %931 = vmatprep.mubr.msk.f32.mxu1 %vm1265_vm1, %v1266_v16  ;;  %v1464_v18 = vsub.f32 %v277_v7, %v285_v11  ;;  %v888_v47 = vld [vmem:[%s1566_s2] ss:$0 sm:$0xff]  ;;  %s890_s21 = sshll.u32 %s1250_s18, 7  ;;  %s244_s22 = scalar_lea.vmem [#allocation7], %s884_s9  ;;  %vm769_vm2 = vcmask 785408  }
  0x5e   : > { %v990_v17 = vpack.c.bf16 %v288_v12, %v285_v11  ;;  %v1466_v19 = vsub.f32 %v278_v8, %v288_v12  ;;  %v1468_v20 = vsub.f32 %v279_v9, %v291_v14  ;;  %v1470_v21 = vsub.f32 %v280_v13, %v294_v15  ;;  %s786_s28 = sshll.u32 %s244_s22, 4  ;;  %s1515_s13 = scalar_lea.hbm %s1568_s4, %s890_s21  ;;  %s1517_s28 = int_to_ptr.vmem [resolvable:$true] %s786_s28 }
  0x5f   : > { %v993_v22 = vpack.c.bf16 %v294_v15, %v291_v14  ;;  %v366_v23 = vand.u32 4294901760, %v1464_v18  ;;  %s772_s24 = scalar_lea.sflag [#allocation4], %s1442_s6  ;;  %s1172_s18 = scalar_lea.vmem %s1517_s28, 128 }
  0x60   : > { %1009 = vmatpush3.bf16.msra.mxu0 %v990_v17  ;;  %991 = vmatpush3.bf16.msra.mxu1 %v990_v17  ;;  %v373_v24 = vand.u32 4294901760, %v1466_v19  ;;  %v380_v30 = vand.u32 4294901760, %v1468_v20  ;;  %v387_v31 = vand.u32 4294901760, %v1470_v21  ;;  %v1002_v39 = vpack.c.bf16 %v1466_v19, %v1464_v18  ;;  %p1173_p4 = scmp.ne.s32.totalorder %s1517_s28, %s1172_s18  ;;  %s1267_s30 = smov [#allocation7]  }
  0x61   : > { %1010 = vmatprep.subr.bf16.mxu0 %v1264_v10  ;;  %992 = vmatprep.subr.bf16.mxu1 %v1264_v10  ;;  %v367_v26 = vsub.f32 %v1464_v18, %v366_v23  ;;  %v1005_v40 = vpack.c.bf16 %v1470_v21, %v1468_v20  ;;  %s1176_s9 = sshll.u32 %s1267_s30, 4  ;;  %s1177_s9 = int_to_ptr.vmem [resolvable:$false] %s1176_s9 }
  0x62   : > { %v1014_v25 = vpack.c.bf16 %v373_v24, %v366_v23  ;;  %v374_v27 = vsub.f32 %v1466_v19, %v373_v24  ;;  %v1017_v33 = vpack.c.bf16 %v387_v31, %v380_v30  ;;  %v381_v34 = vsub.f32 %v1468_v20, %v380_v30  ;;  %p1174_p6 = pnand %p1173_p4, %p1389_p10  ;;  %s1178_s11 = scalar_lea.vmem %s1177_s9, 256 }
  0x63   : > { %v368_v28 = vand.u32 4294901760, %v367_v26  ;;  %v388_v35 = vsub.f32 %v1470_v21, %v387_v31  ;;  %p1179_p12 = scmp.lt.s32.totalorder %s1517_s28, %s1177_s9  ;;  %p1180_p11 = scmp.lt.s32.totalorder %s1178_s11, %s1172_s18 }
  0x64   : > { %1012 = vmatpush3.bf16.msra.mxu0 %v993_v22  ;;  %994 = vmatpush3.bf16.msra.mxu1 %v993_v22  ;;  %v375_v29 = vand.u32 4294901760, %v374_v27  ;;  %v382_v36 = vand.u32 4294901760, %v381_v34  ;;  %p1175_p8 = pneg %p1174_p6 }
  0x65   : > { %1013 = vmatprep.subr.bf16.mxu0 %v1264_v10  ;;  %995 = vmatprep.subr.bf16.mxu1 %v1264_v10  ;;  %v389_v37 = vand.u32 4294901760, %v388_v35  ;;  %p1181_p0 = por %p1180_p11, %p1179_p12 }
  0x66   : > { %v996_v32 = vpack.c.bf16 %v375_v29, %v368_v28 }
  0x67   : > { %v999_v38 = vpack.c.bf16 %v389_v37, %v382_v36  ;;  %p1182_p5 = pnand %p1181_p0, %p1175_p8 }
  0xe9   : > { %v249_v2 = vpop.xlane.xlu0 %248 }
  0xea   : > { %v251_v3 = vmul.f32 0.03125, %v249_v2 }
  0xec   : > { %v252_v4 = vsub.f32 %v245_v0, %v251_v3 }
  0xee   : > { %v253_v5 = vmul.f32 %v252_v4, %v252_v4 }
  0xf0   : > { %v254_v6 = vsel %vm246_vm0, %v253_v5, 0.0 }
  0xf1   : > { %255 = vadd.xlane.f32.xlu0 %v254_v6 }
 0x17e   : > { %v256_v41 = vpop.xlane.xlu0 %255 }
 0x17f   : > { %v257_v42 = vmul.f32 0.03125, %v256_v41 }
 0x181   : > { %v258_v43 = vadd.f32 1e-05, %v257_v42 }
 0x183   : > { %1112 = vrsqrt.f32 %v258_v43 }
 0x18d   : > { %v1113_v44 = vpop.eup %1112 }
 0x18e   : > { %v260_v46 = vmul.f32 %v1113_v44, %v252_v4 }
 0x190   : > { %v268_v48 = vmul.f32 %v887_v45, %v260_v46 }
 0x192   : > { %v276_v49 = vadd.f32 %v888_v47, %v268_v48 }
 0x194   : > { %v282_v50 = vsel %vm246_vm0, %v276_v49, 0 }
 0x195   : > { %v353_v51 = vand.u32 4294901760, %v282_v50 }
 0x197   : > { %v354_v52 = vsub.f32 %v282_v50, %v353_v51 }
 0x199   : > { %v355_v53 = vand.u32 4294901760, %v354_v52 }
 0x19b   : > { %965 = vmatmul.mubr.f32.vlgmr.msra.gmra.mrb[0].mxu0 %v355_v53  ;;  %v356_v54 = vsub.f32 %v354_v52, %v355_v53 }
 0x19c   : > { %1015 = vmatpush3.bf16.msra.mxu0 %v1014_v25  ;;  %975 = vmatprep.mubr.msk.f32.mxu0 %vm1265_vm1, %v1266_v16 }
 0x19d   : > { %v357_v55 = vand.u32 4294901760, %v356_v54  ;;  %1016 = vmatprep.subr.bf16.mxu0 %v1264_v10 }
 0x19f   : > { %932 = vmatmul.mubr.f32.vlgmr.msra.gmra.mrb[0].mxu1 %v357_v55 }
 0x1a0   : > { %997 = vmatpush3.bf16.msra.mxu1 %v996_v32  ;;  %1018 = vmatpush3.bf16.msra.mxu0 %v1017_v33 }
 0x1a1   : > { %998 = vmatprep.subr.bf16.mxu1 %v1264_v10  ;;  %1019 = vmatprep.subr.bf16.mxu0 %v1264_v10 }
 0x1a2   : > { %942 = vmatprep.mubr.msk.f32.mxu1 %vm1265_vm1, %v1266_v16 }
 0x1a3   : > { %976 = vmatmul.mubr.f32.vlgmr.msra.gmra.mrb[0].mxu0 %v353_v51 }
 0x1a4   : > { %1000 = vmatpush3.bf16.msra.mxu1 %v999_v38  ;;  %1021 = vmatpush3.bf16.msra.mxu0 %v990_v17 }
 0x1a5   : > { %1001 = vmatprep.subr.bf16.mxu1 %v1264_v10  ;;  %1022 = vmatprep.subr.bf16.mxu0 %v1264_v10 }
 0x1a6   : > { %986 = vmatprep.mubr.msk.f32.mxu0 %vm1265_vm1, %v1266_v16 }
 0x1a7   : > { %943 = vmatmul.mubr.f32.vlgmr.msra.gmra.mrb[0].mxu1 %v353_v51 }
 0x1a8   : > { %1003 = vmatpush3.bf16.msra.mxu1 %v1002_v39  ;;  %1024 = vmatpush3.bf16.msra.mxu0 %v993_v22 }
 0x1a9   : > { %1004 = vmatprep.subr.bf16.mxu1 %v1264_v10  ;;  %953 = vmatprep.mubr.msk.f32.mxu1 %vm1265_vm1, %v1266_v16 }
 0x1ab   : > { %987 = vmatmul.mubr.f32.vlgmr.msra.gmra.mrb[0].mxu0 %v353_v51 }
 0x1ac   : > { %1006 = vmatpush3.bf16.msra.mxu1 %v1005_v40 }
 0x1af   : > { %954 = vmatmul.mubr.f32.vlgmr.msra.gmra.mrb[0].mxu1 %v354_v52 }
 0x27e   : > { %v765_v56 = vpop.f32.mrb[0].mxu0 }
 0x27f   : > { %v988_v57 = vpop.f32.mrb[1].mxu0 }
 0x282   : > { %v530_v58 = vpop.f32.mrb[0].mxu1 }
 0x283   : > { %v1025_v59 = vadd.f32 %v765_v56, %v530_v58  ;;  %v955_v60 = vpop.f32.mrb[1].mxu1 }
 0x285   : > { %770 = vst.msk [vmem:[%s244_s22] sm:$0xff] %vm769_vm2, %v1025_v59 }
 0x286   : > { %1185 = shalt.err (!%p1182_p5)
}
 0x287   : > { %s1186_s6 = scalar_lea.hbm %s1515_s13, 128  ;;  %s1190_s25 = scalar_lea.hbm %s1568_s4, 256 }
 0x288   : > { %p1187_p9 = scmp.ne.s32.totalorder %s1515_s13, %s1186_s6  ;;  %p1191_p7 = scmp.lt.u32.totalorder %s1515_s13, %s1568_s4 }
 0x289   : > { %p1192_p3 = scmp.lt.u32.totalorder %s1190_s25, %s1186_s6  ;;  %p1194_p4 = scmp.lt.u32.totalorder %s1186_s6, %s1515_s13 }
 0x28a   : > { %p1188_p1 = pnand %p1187_p9, %p1389_p10 }
 0x28b   : > { %p1193_p13 = por %p1192_p3, %p1191_p7 }
 0x28c   : > { %p1189_p2 = pneg %p1188_p1 }
 0x28d   : > { %p1195_p6 = por %p1194_p4, %p1193_p13 }
 0x28f   : > { %p1196_p8 = pnand %p1195_p6, %p1189_p2 }
 0x291   : > { %1199 = shalt.err (!%p1196_p8)
}
 0x292   : > { %1040 = dma.vmem_to_hbm [thread:$0]  (%p1389_p10), %s1517_s28, 128, %s1515_s13, %s772_s24  }
 0x293 PF: > { %s798_s21 = sand.u32 1, %s1238_s15   ;;  %p1586_p12 = scmp.ne.s32.totalorder %s1576_s26, 0 }
 0x294   : > { %p1587_p11 = scmp.ge.s32.totalorder %s1258_s20, 2  ;;  %s799_s22 = scalar_lea.sflag [#allocation4], %s798_s21 }
 0x296   : > { %p1051_p0 = pnand %p1587_p11, %p1586_p12 }
 0x298   : > { %1233 = dma.done.wait (!%p1051_p0), %s799_s22, 128  }
 0x299   : > { %1235 = vsyncadd (!%p1051_p0), %s799_s22, 4294967168  ;;  %s21_s20 = sadd.s32 1, %s1258_s20   ;;  %s1588_s15 = smov %s1242_s16 }
 0x29a   : > { %p18_p5 = scmp.ge.s32.totalorder %s21_s20, 4   ;;  %s1589_s16 = smov %s1246_s17 }
 0x29b   : > { %s1590_s17 = smov %s1398_s10  ;;  %s1591_s18 = smov %s1254_s19 }
 0x29c   : > { %s1592_s19 = smov %s1594_s5  ;;  %20 = sbr.rel (!%p18_p5) target bundleno = 7 (0x7), region = 85 }
 0x2a3   :  { %804 = vsyncpa [#allocation3], 1 }
 0x2a4   :  { %806 = vsyncpa [#allocation3 + $0x1], 1 }
 0x2a5   :  { %807 = vsyncpa [#allocation6], 1 }
 0x2a6   :  { %808 = vsyncpa [#allocation4], 1 }
 0x2a7   :  { %810 = vsyncpa [#allocation4 + $0x1], 1 }

</bundles_post_ra>
